<compile_context>
chip_gen: v7x
topology: tpu7x:2x2x1
jax: 0.10.0
libtpu: 0.0.40
codegen_flags: <defaults>
</compile_context>

<pallas_src>
import jax
import jax.numpy as jnp
import numpy as np
from jax import lax
from jax.experimental import pallas as pl
from jax.experimental.pallas import tpu as pltpu

# ----------------------------- model sizes ---------------------------------
B = 8                  # batch
D = 4                  # dim_discrete (number of discrete tokens per sample)
V = 8                  # vocab_size
E = 16                 # dim_discrete_emb
T = 16                 # dim_time_emb
H = 32                 # dim_hidden
OUT = D * V            # fc_block output width (32)
DV = D * V             # flattened (position, vocab) one-hot width (32)

# The single-slab packing below stores w3 in the same 32-wide columns as
# w1/w2; with this config dim_hidden == dim_discrete*vocab so no column pad.
assert H == OUT, "slab packing assumes dim_hidden == dim_discrete * vocab_size"


def _round_up(x, m):
    return (x + m - 1) // m * m


# Row layout of the single resident weight slab.  Every sub-block starts on a
# multiple of 8 rows so the static in-kernel slices never straddle a sublane
# tile boundary (padding rows are zero).
R1 = _round_up(DV + 2, 8)     # 40: [tables (32) | w_t_eff (1) | b1_eff (1) | 0]
R2 = _round_up(H + 1, 8)      # 40: [w2 (32) | b2 (1) | 0]
R3 = _round_up(H + 1, 8)      # 40: [w3 (32) | b3 (1) | 0]
SLAB_ROWS = R1 + R2 + R3      # 120


# ------------------------------ Pallas kernel -------------------------------
def _discrete_state_mlp_kernel(
    t_ref,      # (bt, 1)          f32   time                     (streamed)
    k_ref,      # (bt, D)          i32   discrete state ids       (streamed)
    w_ref,      # (SLAB_ROWS, H)   f32   packed folded weights    (resident)
    out_ref,    # (bt, OUT)        f32   flat logits
):
    bt = t_ref.shape[0]
    t = t_ref[...]                                    # (bt, 1)
    k = k_ref[...]                                    # (bt, D)

    # --- layer 1: single fused matmul ---------------------------------------
    # Augmented activation x (bt, R1):
    #   cols [0, DV)   : one-hot of the flattened (position, vocab) index
    #   col  DV        : the scalar time t
    #   col  DV + 1    : 1.0   (carries the folded layer-1 bias row)
    #   cols >= DV + 2 : 0.0   (alignment padding, matching zero weight rows)
    col = lax.broadcasted_iota(jnp.int32, (bt, R1), 1)    # one iota, reused
    hit = col == k[:, 0:1]                                # position d = 0
    for d in range(1, D):                                 # static unroll (D=4)
        hit = hit | (col == (k[:, d:d + 1] + d * V))
    x = hit.astype(jnp.float32)
    x = jnp.where(col == DV, t, x)                        # time column
    x = jnp.where(col == DV + 1, 1.0, x)                  # bias (ones) column

    h = jnp.dot(x, w_ref[0:R1, :], preferred_element_type=jnp.float32)
    h = jnp.maximum(h, 0.0)                               # ReLU

    # --- layer 2 -------------------------------------------------------------
    # (bias kept as one broadcast-add from a slab row: same cost as building a
    #  ones-augmented h, and keeps the activation tile narrow)
    h = (jnp.dot(h, w_ref[R1:R1 + H, :], preferred_element_type=jnp.float32)
         + w_ref[R1 + H:R1 + H + 1, :])
    h = jnp.maximum(h, 0.0)                               # ReLU

    # --- layer 3 -------------------------------------------------------------
    out_ref[...] = (
        jnp.dot(h, w_ref[R1 + R2:R1 + R2 + H, :],
                preferred_element_type=jnp.float32)
        + w_ref[R1 + R2 + H:R1 + R2 + H + 1, :])          # (bt, OUT)


# ------------------------------- wrapper ------------------------------------
def discrete_state_mlp_forward(t, k, fp, *, b_tile=4096, min_tiles=1):
    """t: (B,1) f32, k: (B,D) int32, fp: folded params -> logits (B, D, V).

    min_tiles: set to 2 on v7x (2 TensorCores per chip) so the "parallel"
    batch axis actually feeds both cores once the batch is large enough.
    """
    b_in = t.shape[0]
    n_tiles = max(pl.cdiv(b_in, b_tile), 1)
    if b_in >= 16:
        n_tiles = max(n_tiles, min_tiles)
    bt = _round_up(pl.cdiv(b_in, n_tiles), 8)          # batch tile (>=8 rows)
    b_pad = n_tiles * bt                               # never overshoots by >bt
    if b_pad != b_in:
        t = jnp.pad(t, ((0, b_pad - b_in), (0, 0)))
        k = jnp.pad(k, ((0, b_pad - b_in), (0, 0)))

    slab = fp["slab"]
    cost = pl.CostEstimate(
        flops=2 * b_pad * ((DV + 2) * H + H * H + H * OUT),
        transcendentals=0,
        bytes_accessed=b_pad * 4 * (1 + D + OUT) + 4 * slab.size,
    )

    out = pl.pallas_call(
        _discrete_state_mlp_kernel,
        out_shape=jax.ShapeDtypeStruct((b_pad, OUT), jnp.float32),
        grid=(n_tiles,),
        in_specs=[
            pl.BlockSpec((bt, 1), lambda i: (i, 0)),           # t    (streamed)
            pl.BlockSpec((bt, D), lambda i: (i, 0)),           # k    (streamed)
            pl.BlockSpec((SLAB_ROWS, H), lambda i: (0, 0)),    # slab (resident)
        ],
        out_specs=pl.BlockSpec((bt, OUT), lambda i: (i, 0)),
        compiler_params=pltpu.CompilerParams(
            dimension_semantics=("parallel",)),
        cost_estimate=cost,
    )(t.astype(jnp.float32), k.astype(jnp.int32), slab)

    if b_pad != b_in:
        out = out[:b_in]
    return out.reshape(b_in, D, V)      # contiguous reshape only (no col slice)


# --------------------------- deterministic params ---------------------------
def make_params(key):
    ks = jax.random.split(key, 8)

    def xavier(kk, shape):
        fan_in, fan_out = shape[0], shape[1]
        a = np.sqrt(6.0 / (fan_in + fan_out))
        return jax.random.uniform(kk, shape, jnp.float32, -a, a)

    return {
        "emb_table": jax.random.normal(ks[0], (V, E), jnp.float32) * 0.1,
        "wt":   xavier(ks[1], (1, T)),
        "bt":   jnp.zeros((1, T), jnp.float32),
        "wkan": xavier(ks[2], (D * E, E)),
        "w1t":  xavier(ks[3], (T, H)),
        "w1k":  xavier(ks[4], (E, H)),
        "b1":   jnp.zeros((1, H), jnp.float32),
        "w2":   xavier(ks[5], (H, H)),
        "b2":   jnp.zeros((1, H), jnp.float32),
        "w3":   xavier(ks[6], (H, OUT)),
        "b3":   jnp.zeros((1, OUT), jnp.float32),
    }


def fold_params(p):
    """Offline algebraic folding + single-slab packing — done once."""
    w_t_eff = p["wt"] @ p["w1t"]                          # (1, H)
    b1_eff = p["bt"] @ p["w1t"] + p["b1"]                 # (1, H)
    w_k_eff = p["wkan"] @ p["w1k"]                        # (D*E, H)
    silu_emb = jax.nn.silu(p["emb_table"])                # (V, E)
    # Per-position lookup tables, flattened row-major to (D*V, H): row d*V+v
    # is the full layer-1 contribution of "token v at position d".
    tables = jnp.concatenate(
        [silu_emb @ w_k_eff[d * E:(d + 1) * E, :] for d in range(D)], axis=0
    )                                                     # (D*V, H)

    slab = jnp.zeros((SLAB_ROWS, H), jnp.float32)
    slab = slab.at[0:DV, :].set(tables)                   # one-hot rows
    slab = slab.at[DV, :].set(w_t_eff[0])                 # time row
    slab = slab.at[DV + 1, :].set(b1_eff[0])              # layer-1 bias row
    slab = slab.at[R1:R1 + H, :].set(p["w2"])
    slab = slab.at[R1 + H, :].set(p["b2"][0])
    slab = slab.at[R1 + R2:R1 + R2 + H, :].set(p["w3"])
    slab = slab.at[R1 + R2 + H, :].set(p["b3"][0])
    return {"slab": slab.astype(jnp.float32)}


# ------------------------------ pure-JAX reference --------------------------
def reference_forward(t, k, p):
    """Unfolded reference mirroring the PyTorch module's forward."""
    ke = jnp.take(p["emb_table"], k, axis=0).reshape(k.shape[0], D * E)
    t_emb = t @ p["wt"] + p["bt"]
    k_emb = jax.nn.silu(ke) @ p["wkan"]
    h = t_emb @ p["w1t"] + k_emb @ p["w1k"] + p["b1"]
    h = jax.nn.relu(h)
    h = jax.nn.relu(h @ p["w2"] + p["b2"])
    return (h @ p["w3"] + p["b3"]).reshape(k.shape[0], D, V)


if __name__ == "__main__":
    root = jax.random.PRNGKey(0)
    kp, kt, kk = jax.random.split(root, 3)
    raw_params = make_params(kp)
    folded_params = fold_params(raw_params)

    t = jax.random.uniform(kt, (B, 1), jnp.float32)          # time in [0, 1)
    k = jax.random.randint(kk, (B, D), 0, V, jnp.int32)      # discrete states

    logits = discrete_state_mlp_forward(t, k, folded_params)
    logits = jax.block_until_ready(logits)

    ref = reference_forward(t, k, raw_params)
    np.testing.assert_allclose(np.asarray(logits), np.asarray(ref),
                               rtol=1e-4, atol=1e-4)
    assert logits.shape == (B, D, V)
    print("KERNEL_OK")
</pallas_src>

<mosaic_0001>
module attributes {stable_mosaic.version = 11 : i64} {
  func.func @_discrete_state_mlp_kernel(%arg0: i32, %arg1: memref<8x1xf32, #tpu.memory_space<vmem>>, %arg2: memref<8x4xi32, #tpu.memory_space<vmem>>, %arg3: memref<120x32xf32, #tpu.memory_space<vmem>>, %arg4: memref<8x32xf32, #tpu.memory_space<vmem>>) attributes {dimension_semantics = [#tpu.dimension_semantics<parallel>], iteration_bounds = array<i64: 1>, scalar_prefetch = 0 : i64, scratch_operands = 0 : i64, tpu.core_type = #tpu.core_type<tc>, window_params = [{transform_indices = @transform_0, window_bounds = array<i64: 8, 1>}, {transform_indices = @transform_1, window_bounds = array<i64: 8, 4>}, {pipeline_mode = #tpu.pipeline_mode<synchronous>, transform_indices = @transform_2, window_bounds = array<i64: 120, 32>}, {transform_indices = @transform_3, window_bounds = array<i64: 8, 32>}]} {
    %c0 = arith.constant 0 : index
    %c0_0 = arith.constant 0 : index
    %0 = vector.load %arg1[%c0, %c0_0] : memref<8x1xf32, #tpu.memory_space<vmem>>, vector<8x1xf32>
    %c0_1 = arith.constant 0 : index
    %c0_2 = arith.constant 0 : index
    %1 = vector.load %arg2[%c0_1, %c0_2] : memref<8x4xi32, #tpu.memory_space<vmem>>, vector<8x4xi32>
    %2 = tpu.iota {dimensions = array<i32: 1>} : vector<8x40xi32>
    %3 = vector.extract_strided_slice %1 {offsets = [0, 0], sizes = [8, 1], strides = [1, 1]} : vector<8x4xi32> to vector<8x1xi32>
    %4 = vector.broadcast %3 : vector<8x1xi32> to vector<8x40xi32>
    %5 = arith.cmpi eq, %2, %4 : vector<8x40xi32>
    %6 = vector.extract_strided_slice %1 {offsets = [0, 1], sizes = [8, 1], strides = [1, 1]} : vector<8x4xi32> to vector<8x1xi32>
    %c8_i32 = arith.constant 8 : i32
    %7 = vector.broadcast %c8_i32 : i32 to vector<8x1xi32>
    %8 = arith.addi %6, %7 : vector<8x1xi32>
    %9 = vector.broadcast %8 : vector<8x1xi32> to vector<8x40xi32>
    %10 = arith.cmpi eq, %2, %9 : vector<8x40xi32>
    %11 = arith.ori %5, %10 : vector<8x40xi1>
    %12 = vector.extract_strided_slice %1 {offsets = [0, 2], sizes = [8, 1], strides = [1, 1]} : vector<8x4xi32> to vector<8x1xi32>
    %c16_i32 = arith.constant 16 : i32
    %13 = vector.broadcast %c16_i32 : i32 to vector<8x1xi32>
    %14 = arith.addi %12, %13 : vector<8x1xi32>
    %15 = vector.broadcast %14 : vector<8x1xi32> to vector<8x40xi32>
    %16 = arith.cmpi eq, %2, %15 : vector<8x40xi32>
    %17 = arith.ori %11, %16 : vector<8x40xi1>
    %18 = vector.extract_strided_slice %1 {offsets = [0, 3], sizes = [8, 1], strides = [1, 1]} : vector<8x4xi32> to vector<8x1xi32>
    %c24_i32 = arith.constant 24 : i32
    %19 = vector.broadcast %c24_i32 : i32 to vector<8x1xi32>
    %20 = arith.addi %18, %19 : vector<8x1xi32>
    %21 = vector.broadcast %20 : vector<8x1xi32> to vector<8x40xi32>
    %22 = arith.cmpi eq, %2, %21 : vector<8x40xi32>
    %23 = arith.ori %17, %22 : vector<8x40xi1>
    %24 = arith.extui %23 : vector<8x40xi1> to vector<8x40xi32>
    %25 = arith.sitofp %24 : vector<8x40xi32> to vector<8x40xf32>
    %c32_i32 = arith.constant 32 : i32
    %26 = vector.broadcast %c32_i32 : i32 to vector<8x40xi32>
    %27 = arith.cmpi eq, %2, %26 : vector<8x40xi32>
    %28 = vector.shape_cast %0 : vector<8x1xf32> to vector<8x1xf32>
    %29 = vector.broadcast %28 : vector<8x1xf32> to vector<8x40xf32>
    %30 = arith.select %27, %29, %25 : vector<8x40xi1>, vector<8x40xf32>
    %c33_i32 = arith.constant 33 : i32
    %31 = vector.broadcast %c33_i32 : i32 to vector<8x40xi32>
    %32 = arith.cmpi eq, %2, %31 : vector<8x40xi32>
    %cst = arith.constant 1.000000e+00 : f32
    %33 = vector.broadcast %cst : f32 to vector<8x40xf32>
    %34 = arith.select %32, %33, %30 : vector<8x40xi1>, vector<8x40xf32>
    %c0_3 = arith.constant 0 : index
    %c0_4 = arith.constant 0 : index
    %35 = vector.load %arg3[%c0_3, %c0_4] : memref<120x32xf32, #tpu.memory_space<vmem>>, vector<40x32xf32>
    %cst_5 = arith.constant dense<0.000000e+00> : vector<8x32xf32>
    %36 = tpu.matmul %34, %35, %cst_5 {dimension_numbers = #tpu.dot_dimension_numbers<[1], [0], [0], [1], [0, 0, 1, 1], [], []>} : vector<8x40xf32>, vector<40x32xf32>, vector<8x32xf32> -> vector<8x32xf32>
    %cst_6 = arith.constant 0.000000e+00 : f32
    %37 = vector.broadcast %cst_6 : f32 to vector<8x32xf32>
    %38 = arith.maximumf %36, %37 : vector<8x32xf32>
    %c40 = arith.constant 40 : index
    %c0_7 = arith.constant 0 : index
    %39 = vector.load %arg3[%c40, %c0_7] : memref<120x32xf32, #tpu.memory_space<vmem>>, vector<32x32xf32>
    %cst_8 = arith.constant dense<0.000000e+00> : vector<8x32xf32>
    %40 = tpu.matmul %38, %39, %cst_8 {dimension_numbers = #tpu.dot_dimension_numbers<[1], [0], [0], [1], [0, 0, 1, 1], [], []>} : vector<8x32xf32>, vector<32x32xf32>, vector<8x32xf32> -> vector<8x32xf32>
    %c72 = arith.constant 72 : index
    %c0_9 = arith.constant 0 : index
    %41 = vector.load %arg3[%c72, %c0_9] : memref<120x32xf32, #tpu.memory_space<vmem>>, vector<1x32xf32>
    %42 = vector.broadcast %41 : vector<1x32xf32> to vector<8x32xf32>
    %43 = arith.addf %40, %42 : vector<8x32xf32>
    %cst_10 = arith.constant 0.000000e+00 : f32
    %44 = vector.broadcast %cst_10 : f32 to vector<8x32xf32>
    %45 = arith.maximumf %43, %44 : vector<8x32xf32>
    %c80 = arith.constant 80 : index
    %c0_11 = arith.constant 0 : index
    %46 = vector.load %arg3[%c80, %c0_11] : memref<120x32xf32, #tpu.memory_space<vmem>>, vector<32x32xf32>
    %cst_12 = arith.constant dense<0.000000e+00> : vector<8x32xf32>
    %47 = tpu.matmul %45, %46, %cst_12 {dimension_numbers = #tpu.dot_dimension_numbers<[1], [0], [0], [1], [0, 0, 1, 1], [], []>} : vector<8x32xf32>, vector<32x32xf32>, vector<8x32xf32> -> vector<8x32xf32>
    %c112 = arith.constant 112 : index
    %c0_13 = arith.constant 0 : index
    %48 = vector.load %arg3[%c112, %c0_13] : memref<120x32xf32, #tpu.memory_space<vmem>>, vector<1x32xf32>
    %49 = vector.broadcast %48 : vector<1x32xf32> to vector<8x32xf32>
    %50 = arith.addf %47, %49 : vector<8x32xf32>
    %c0_14 = arith.constant 0 : index
    %c0_15 = arith.constant 0 : index
    %51 = vector.load %arg4[%c0_14, %c0_15] : memref<8x32xf32, #tpu.memory_space<vmem>>, vector<8x32xf32>
    tpu.vector_store %arg4[%c0_14, %c0_15], %50 {strides = array<i32>} : memref<8x32xf32, #tpu.memory_space<vmem>>, vector<8x32xf32>,
    return
  }
  func.func @transform_0(%arg0: i32) -> (i32, i32) {
    %c0_i32 = arith.constant 0 : i32
    %c0_i32_0 = arith.constant 0 : i32
    return %arg0, %c0_i32 : i32, i32
  }
  func.func @transform_1(%arg0: i32) -> (i32, i32) {
    %c0_i32 = arith.constant 0 : i32
    %c0_i32_0 = arith.constant 0 : i32
    return %arg0, %c0_i32 : i32, i32
  }
  func.func @transform_2(%arg0: i32) -> (i32, i32) {
    %c0_i32 = arith.constant 0 : i32
    %c0_i32_0 = arith.constant 0 : i32
    %c0_i32_1 = arith.constant 0 : i32
    return %c0_i32, %c0_i32_0 : i32, i32
  }
  func.func @transform_3(%arg0: i32) -> (i32, i32) {
    %c0_i32 = arith.constant 0 : i32
    %c0_i32_0 = arith.constant 0 : i32
    return %arg0, %c0_i32 : i32, i32
  }
}

</mosaic_0001>

<bundles_post_ra>
// kernel: tpu_custom_call.1
= control target key start
LH: loop header
LB: loop body
LE: loop exit
PB: predicated region body
PF: predicated region fallthrough
CT: control target
= control target key end

     0   :  { %v426_v1 = vmov 0   ;;  %v427_v2 = vmov 2   ;;  %s529_s0 = inlined_call_operand.vmem [shape: f32[8,1], index: 0, kind: input, shape index: {}]   ;;  %s530_s1 = inlined_call_operand.vmem [shape: s32[8,4], index: 1, kind: input, shape index: {}]   ;;  %s531_s2 = inlined_call_operand.vmem [shape: f32[120,32], index: 2, kind: input, shape index: {}]   ;;  %s532_s3 = inlined_call_operand.hbm [shape: f32[8,32], index: 3, kind: output, shape index: {}]  }
   0x1   :  { %v16_v0 = vld [vmem:[%s530_s1] sm:$0xff]  ;;  %396 = vset.pattern.permute.xlu0 %v426_v1  ;;  %398 = vset.pattern.permute.xlu1 %v427_v2 }
   0x2   :  { %v29_v3 = vadd.s32 16, %v16_v0 }
   0x3   :  { %8 = vsyncpa [#allocation3], 0  ;;  %20 = vperm.xlu0 %396, %v16_v0   ;;  %v23_v4 = vadd.s32 8, %v16_v0  ;;  %v52_v5 = vld [vmem:[%s531_s2] sm:$0xff]  ;;  %v53_v6 = vld [vmem:[%s531_s2 + $0x8] sm:$0xff]  ;;  %v35_v7 = vadd.s32 24, %v16_v0  ;;  %v17_v21 = vlaneseq }
   0x4   :  { %31 = vperm.xlu1 %398, %v29_v3   ;;  %v428_v8 = vmov 0.0|0.0   ;;  %v371_v9 = vpack.c.bf16 %v53_v6, %v52_v5  ;;  %v429_v10 = vmov 1   ;;  %v430_v11 = vmov 3   ;;  %v54_v12 = vld [vmem:[%s531_s2 + $0x10] sm:$0xff]  ;;  %v55_v13 = vld [vmem:[%s531_s2 + $0x18] sm:$0xff]  ;;  %v15_v15 = vld [vmem:[%s529_s0] sm:$0xff] }
   0x5   :  { %370 = vmatprep.subr.bf16.mxu0 %v428_v8  ;;  %376 = vmatprep.subr.bf16.mxu1 %v428_v8  ;;  %v374_v14 = vpack.c.bf16 %v55_v13, %v54_v12  ;;  %v431_v16 = vmov 0.0   ;;  %v56_v17 = vld [vmem:[%s531_s2 + $0x20] sm:$0xff]  ;;  %vm432_vm0 = vmmov 0   ;;  %v132_v18 = vld [vmem:[%s531_s2 + $0x28] sm:$0xff]  ;;  %v133_v19 = vld [vmem:[%s531_s2 + $0x30] sm:$0xff]  ;;  %v18_v24 = vand.u32 127, %v17_v21 }
   0x6   :  { %372 = vmatpush3.bf16.msra.mxu0 %v371_v9  ;;  %345 = vmatprep.mubr.msk.f32.mxu0 %vm432_vm0, %v431_v16  ;;  %v377_v20 = vpack.c.bf16 %v133_v19, %v132_v18  ;;  %vm57_vm10 = vcmask 326656   ;;  %v134_v31 = vld [vmem:[%s531_s2 + $0x38] sm:$0xff]  ;;  %v135_v32 = vld [vmem:[%s531_s2 + $0x40] sm:$0xff]  ;;  %v216_v34 = vld [vmem:[%s531_s2 + $0x50] sm:$0xff]  ;;  %vm141_vm11 = vcmask 261120   ;;  %s433_s17 = smov [#allocation2]  }
   0x7   :  { %397 = vset.pattern.permute.xlu0 %v429_v10  ;;  %373 = vmatprep.subr.bf16.mxu0 %v428_v8  ;;  %vm43_vm8 = vcmp.eq.s32.totalorder %v18_v24, 32  ;;  %vm50_vm9 = vcmp.eq.s32.totalorder %v18_v24, 33  ;;  %v380_v33 = vpack.c.bf16 %v135_v32, %v134_v31  ;;  %v217_v35 = vld [vmem:[%s531_s2 + $0x58] sm:$0xff]  ;;  %v218_v40 = vld [vmem:[%s531_s2 + $0x60] sm:$0xff]  ;;  %v219_v41 = vld [vmem:[%s531_s2 + $0x68] sm:$0xff]  ;;  %s305_s1 = sshll.u32 %s433_s17, 4  ;;  %s306_s1 = int_to_ptr.vmem [resolvable:$true] %s305_s1 }
   0x8   :  { %399 = vset.pattern.permute.xlu1 %v430_v11  ;;  %25 = vperm.xlu0 %397, %v23_v4   ;;  %v383_v37 = vpack.c.bf16 %v217_v35, %v216_v34  ;;  %v386_v42 = vpack.c.bf16 %v219_v41, %v218_v40  ;;  %v315_v43 = vld [vmem:[%s531_s2 + $0x48] ss:$0 sm:$0xff]  ;;  %v317_v48 = vld [vmem:[%s531_s2 + $0x70] ss:$0 sm:$0xff]  ;;  %s402_s18 = scalar_lea.vmem %s306_s1, 128  ;;  %p407_p1 = scmp.lt.s32.totalorder %s306_s1, %s306_s1 }
   0x9   :  { %37 = vperm.xlu1 %399, %v35_v7   ;;  %356 = vmatprep.mubr.msk.f32.mxu1 %vm432_vm0, %v431_v16  ;;  %p403_p0 = scmp.ne.s32.totalorder %s306_s1, %s402_s18  ;;  %p408_p2 = scmp.lt.s32.totalorder %s402_s18, %s402_s18 }
   0xa   :  { %375 = vmatpush3.bf16.msra.mxu0 %v374_v14  ;;  %378 = vmatpush3.bf16.msra.mxu1 %v377_v20 }
   0xb   :  { %343 = vmatprep.subr.mxu0 %v431_v16  ;;  %379 = vmatprep.subr.bf16.mxu1 %v428_v8  ;;  %p409_p3 = por %p408_p2, %p407_p1 }
   0xc   :  { %401 = vset.pattern.permute.xlu0 %v426_v1 }
   0xd   :  { %400 = vset.pattern.permute.xlu1 %v426_v1  ;;  %p410_p4 = pnand %p409_p3, %p403_p0 }
   0xe   :  { %46 = vperm.xlu1 %400, %v15_v15   ;;  %344 = vmatpush3.msra.mxu0 %v56_v17 }
   0xf   :  { %381 = vmatpush3.bf16.msra.mxu1 %v380_v33 }
  0x10   :  { %382 = vmatprep.subr.bf16.mxu1 %v428_v8 }
  0x82   :  { %v21_v22 = vpop.permute.xlu0 %20 }
  0x83   :  { %v32_v23 = vpop.permute.xlu1 %31  ;;  %vm22_vm1 = vcmp.eq.s32.totalorder %v18_v24, %v21_v22 }
  0x84   :  { %vm33_vm3 = vcmp.eq.s32.totalorder %v18_v24, %v32_v23 }
  0x87   :  { %v26_v25 = vpop.permute.xlu0 %25 }
  0x88   :  { %vm27_vm2 = vcmp.eq.s32.totalorder %v18_v24, %v26_v25  ;;  %v38_v26 = vpop.permute.xlu1 %37 }
  0x89   :  { %vm28_vm4 = vmor %vm22_vm1, %vm27_vm2  ;;  %vm39_vm5 = vcmp.eq.s32.totalorder %v18_v24, %v38_v26 }
  0x8a   :  { %vm34_vm6 = vmor %vm28_vm4, %vm33_vm3 }
  0x8b   :  { %vm40_vm7 = vmor %vm34_vm6, %vm39_vm5 }
  0x8c   :  { %v313_v27 = vsel %vm40_vm7, 1.0, %v431_v16 }
  0x8d   :  { %v47_v28 = vpop.permute.xlu1 %46 }
  0x8e   :  { %v49_v29 = vsel %vm43_vm8, %v47_v28, %v313_v27 }
  0x8f   :  { %v51_v30 = vsel %vm50_vm9, 1.0, %v49_v29 }
  0x90   :  { %346 = vmatmul.mubr.msk.f32.vlgmr.msra.gmra.mrb[0].mxu0 %vm57_vm10, %v51_v30 }
 0x163   :  { %v127_v36 = vpop.f32.mrb[0].mxu0 }
 0x164   :  { %v131_v38 = vmax.f32 %v127_v36, 0.0  ;;  %v347_v39 = vpop.f32.mrb[1].mxu0 }
 0x166   :  { %357 = vmatmul.mubr.msk.f32.vlgmr.msra.gmra.mrb[0].mxu1 %vm141_vm11, %v131_v38 }
 0x167   :  { %384 = vmatpush3.bf16.msra.mxu1 %v383_v37  ;;  %367 = vmatprep.mubr.msk.f32.mxu1 %vm432_vm0, %v431_v16 }
 0x168   :  { %385 = vmatprep.subr.bf16.mxu1 %v428_v8 }
 0x16b   :  { %387 = vmatpush3.bf16.msra.mxu1 %v386_v42 }
 0x239   :  { %v211_v44 = vpop.f32.mrb[0].mxu1 }
 0x23a   :  { %v212_v45 = vadd.f32 %v315_v43, %v211_v44  ;;  %v358_v46 = vpop.f32.mrb[1].mxu1 }
 0x23c   :  { %v215_v47 = vmax.f32 %v212_v45, 0.0 }
 0x23e   :  { %368 = vmatmul.mubr.msk.f32.vlgmr.msra.gmra.mrb[2].mxu1 %vm141_vm11, %v215_v47 }
 0x311   :  { %v294_v49 = vpop.f32.mrb[2].mxu1 }
 0x312   :  { %v295_v50 = vadd.f32 %v317_v48, %v294_v49  ;;  %v369_v51 = vpop.f32.mrb[3].mxu1 }
 0x314   :  { %298 = vst.msk [vmem:[#allocation2] sm:$0xff] %vm141_vm11, %v295_v50 }
 0x315   :  { %413 = shalt.err (!%p410_p4)
}
 0x316   :  { %s414_s21 = scalar_lea.hbm %s532_s3, 128 }
 0x317   :  { %p415_p5 = scmp.ne.s32.totalorder %s532_s3, %s414_s21  ;;  %p418_p6 = scmp.lt.u32.totalorder %s414_s21, %s532_s3 }
 0x319   :  { %p420_p7 = pnand %p418_p6, %p415_p5 }
 0x31b   :  { %423 = shalt.err (!%p420_p7)
}
 0x31c   :  { %308 = dma.vmem_to_hbm [thread:$0]  %s306_s1, 128, %s532_s3, [#allocation3]  }
 0x31d   :  { %424 = dma.done.wait [#allocation3], 128  }
 0x31e   :  { %425 = vsyncadd [#allocation3], 4294967168 }
 0x31f   :  { %312 = vsyncpa [#allocation3], 1 }

</bundles_post_ra>
